<compile_context>
chip_gen: v7x
topology: tpu7x:2x2x1
jax: 0.10.0
libtpu: 0.0.40
codegen_flags: <defaults>
</compile_context>

<pallas_src>
import math

import jax
import jax.numpy as jnp
from jax.experimental import pallas as pl
from jax.experimental.pallas import tpu as pltpu


def _gelu_tanh(x):
    # GELU with tanh approximation (matches torch.nn.GELU(approximate='tanh'))
    c = math.sqrt(2.0 / math.pi)
    return 0.5 * x * (1.0 + jnp.tanh(c * (x + 0.044715 * x * x * x)))


def _round_up(x, m):
    return ((x + m - 1) // m) * m


def _cdiv(a, b):
    return -(-a // b)


def _vmem_budget_bytes():
    """~3/4 of physical VMEM: ~48 MiB on v7x, ~96 MiB on v5e/v6e."""
    cap = 64 * 1024 * 1024  # safe fallback (v7x physical per-TC VMEM)
    try:
        info = pltpu.get_tpu_info()
        cap = int(getattr(info, "vmem_capacity_bytes", cap))
    except Exception:
        pass
    return (cap * 3) // 4


def _pick_tm(M, tm_req):
    """Row tile: as large as requested, min 16; prefer >=2 tiles (megacore)."""
    tm = max(16, min(tm_req, _round_up(M, 16)))
    if _cdiv(M, tm) < 2 and M >= 256:
        # Split mid-size M into 2 row tiles so both TensorCores get work.
        tm = max(128, _round_up(_cdiv(M, 2), 16))
    return tm


def _pick_th(hidden, th, fits):
    """Hidden chunk: multiple of 128 dividing `hidden` that fits VMEM budget."""
    if th is not None:
        assert hidden % th == 0, "th must divide hidden"
        return th
    candidates = (1024, 768, 512, 384, 256, 128)
    for cand in candidates:
        if cand <= hidden and hidden % cand == 0 and fits(cand):
            return cand
    for cand in candidates:
        if cand <= hidden and hidden % cand == 0:
            return cand
    return hidden


# ---------------------------------------------------------------------------
# Kernels
# ---------------------------------------------------------------------------
def _mlp_kernel_resident(x_ref, wfc_ref, bfc_ref, wproj_ref, bproj_ref, o_ref):
    # Full weights resident in VMEM; one shot over the whole hidden dim.
    # x_ref: (tm, n_embd)  wfc_ref: (n_embd, hidden)  wproj_ref: (hidden, n_embd)
    h = jnp.dot(x_ref[...], wfc_ref[...], preferred_element_type=jnp.float32)
    h = h + bfc_ref[...].astype(jnp.float32)
    g = _gelu_tanh(h)  # GELU / bias math in f32
    y = jnp.dot(g.astype(wproj_ref.dtype), wproj_ref[...],
                preferred_element_type=jnp.float32)
    o_ref[...] = (y + bproj_ref[...].astype(jnp.float32)).astype(o_ref.dtype)


def _mlp_kernel_chunked(x_ref, wfc_ref, bfc_ref, wproj_ref, bproj_ref, o_ref,
                        acc_ref):
    # Hidden-dim chunked reduction with f32 VMEM accumulator.
    j = pl.program_id(1)

    @pl.when(j == 0)
    def _init():
        acc_ref[...] = jnp.zeros_like(acc_ref)

    h = jnp.dot(x_ref[...], wfc_ref[...], preferred_element_type=jnp.float32)
    h = h + bfc_ref[...].astype(jnp.float32)
    g = _gelu_tanh(h)
    acc_ref[...] += jnp.dot(g.astype(wproj_ref.dtype), wproj_ref[...],
                            preferred_element_type=jnp.float32)

    @pl.when(j == pl.num_programs(1) - 1)
    def _finalize():
        y = acc_ref[...] + bproj_ref[...].astype(jnp.float32)
        o_ref[...] = y.astype(o_ref.dtype)


# ---------------------------------------------------------------------------
# Wrapper
# ---------------------------------------------------------------------------
def mlp_pallas(x, wfc_t, bfc, wproj_t, bproj, *, tm=512, th=None,
               compute_dtype=None, force_path=None):
    """Fused GPT-2 MLP: y = GELU_tanh(x @ Wfc_t + bfc) @ Wproj_t + bproj.

    x:       (B, T, n_embd)
    wfc_t:   (n_embd, 4*n_embd)  -- (in, out) layout; transpose torch weight ONCE
    bfc:     (4*n_embd,)
    wproj_t: (4*n_embd, n_embd)  -- (in, out) layout
    bproj:   (n_embd,)
    compute_dtype: optional explicit MXU operand dtype (e.g. jnp.bfloat16);
                   accumulation stays f32 inside the kernel.
    force_path: None | "resident" | "chunked"  (testing / override)
    """
    if compute_dtype is not None:
        # Explicit MXU dtype policy: cast operands once up front (in a real
        # model the weight cast is hoisted to init time).
        x = x.astype(compute_dtype)
        wfc_t = wfc_t.astype(compute_dtype)
        wproj_t = wproj_t.astype(compute_dtype)

    B, T, n_embd = x.shape
    hidden = wfc_t.shape[1]
    assert wfc_t.shape == (n_embd, hidden)
    assert wproj_t.shape == (hidden, n_embd)
    M = B * T

    x2d = x.reshape(M, n_embd)
    bfc2 = bfc.reshape(1, hidden)
    bproj2 = bproj.reshape(1, n_embd)

    tm = _pick_tm(M, tm)
    nm = _cdiv(M, tm)  # ragged last tile handled by the grid; no host-side pad

    x_itemsize = jnp.dtype(x.dtype).itemsize
    w_itemsize = jnp.dtype(wfc_t.dtype).itemsize
    budget = _vmem_budget_bytes()

    nbytes = lambda a: a.size * jnp.dtype(a.dtype).itemsize
    w_bytes = (wfc_t.size + wproj_t.size) * w_itemsize
    out_bytes = M * n_embd * x_itemsize
    flops = 4 * M * n_embd * hidden          # two matmuls, 2*M*K*N each
    transcendentals = M * hidden             # tanh inside GELU

    # ---- path selection: weights resident vs hidden-chunked ----------------
    resident_footprint = (
        2 * w_bytes                          # weights (conservatively x2 buffers)
        + 2 * 2 * tm * n_embd * x_itemsize   # x + out blocks, double-buffered
        + 2 * tm * hidden * 4                # f32 h / gelu intermediates
        + tm * n_embd * 4                    # f32 y intermediate
    )
    use_resident = resident_footprint <= int(budget * 0.9)
    if force_path == "resident":
        use_resident = True
    elif force_path == "chunked":
        use_resident = False

    if use_resident:
        cost = pl.CostEstimate(
            flops=flops, transcendentals=transcendentals,
            bytes_accessed=(nbytes(x2d) + w_bytes + nbytes(bfc2) + nbytes(bproj2)
                            + out_bytes),
        )
        out2d = pl.pallas_call(
            _mlp_kernel_resident,
            out_shape=jax.ShapeDtypeStruct((M, n_embd), x.dtype),
            grid_spec=pltpu.PrefetchScalarGridSpec(
                num_scalar_prefetch=0,
                grid=(nm,),
                in_specs=[
                    pl.BlockSpec((tm, n_embd), lambda i: (i, 0)),       # x rows
                    pl.BlockSpec((n_embd, hidden), lambda i: (0, 0)),   # Wfc^T resident
                    pl.BlockSpec((1, hidden), lambda i: (0, 0)),        # bfc resident
                    pl.BlockSpec((hidden, n_embd), lambda i: (0, 0)),   # Wproj^T resident
                    pl.BlockSpec((1, n_embd), lambda i: (0, 0)),        # bproj resident
                ],
                out_specs=pl.BlockSpec((tm, n_embd), lambda i: (i, 0)),
            ),
            compiler_params=pltpu.CompilerParams(
                dimension_semantics=("parallel",),
                vmem_limit_bytes=budget,
            ),
            cost_estimate=cost,
        )(x2d, wfc_t, bfc2, wproj_t, bproj2)
    else:
        def _chunked_fits(th_cand):
            fp = (2 * 2 * n_embd * th_cand * w_itemsize     # Wfc + Wproj chunks, x2 buffers
                  + 2 * 2 * tm * n_embd * x_itemsize        # x + out blocks
                  + tm * n_embd * 4                         # f32 acc scratch
                  + 2 * tm * th_cand * 4)                   # f32 h / gelu intermediates
            return fp <= int(budget * 0.9)

        th_sel = _pick_th(hidden, th, _chunked_fits)
        nh = hidden // th_sel
        cost = pl.CostEstimate(
            flops=flops, transcendentals=transcendentals,
            bytes_accessed=(nbytes(x2d) + nm * w_bytes      # weights re-streamed per row tile
                            + nbytes(bfc2) + nbytes(bproj2) + out_bytes),
        )
        out2d = pl.pallas_call(
            _mlp_kernel_chunked,
            out_shape=jax.ShapeDtypeStruct((M, n_embd), x.dtype),
            grid_spec=pltpu.PrefetchScalarGridSpec(
                num_scalar_prefetch=0,
                grid=(nm, nh),                              # reduction (hidden) axis last
                in_specs=[
                    pl.BlockSpec((tm, n_embd), lambda i, j: (i, 0)),    # x rows (resident over j)
                    pl.BlockSpec((n_embd, th_sel), lambda i, j: (0, j)),  # Wfc^T chunk
                    pl.BlockSpec((1, th_sel), lambda i, j: (0, j)),       # bfc chunk
                    pl.BlockSpec((th_sel, n_embd), lambda i, j: (j, 0)),  # Wproj^T chunk
                    pl.BlockSpec((1, n_embd), lambda i, j: (0, 0)),       # bproj resident
                ],
                out_specs=pl.BlockSpec((tm, n_embd), lambda i, j: (i, 0)),
                scratch_shapes=[pltpu.VMEM((tm, n_embd), jnp.float32)],
            ),
            compiler_params=pltpu.CompilerParams(
                dimension_semantics=("parallel", "arbitrary"),
                vmem_limit_bytes=budget,
            ),
            cost_estimate=cost,
        )(x2d, wfc_t, bfc2, wproj_t, bproj2)

    return out2d.reshape(B, T, n_embd)


def mlp_reference(x, w_fc, b_fc, w_proj, b_proj):
    # w_fc / w_proj in torch nn.Linear layout (out_features, in_features).
    h = jnp.einsum("btn,hn->bth", x, w_fc) + b_fc
    g = _gelu_tanh(h)
    return jnp.einsum("bth,nh->btn", g, w_proj) + b_proj


if __name__ == "__main__":
    # Small config consistent with the module: n_embd=64 -> hidden=256
    B, T, n_embd = 2, 8, 64
    hidden = 4 * n_embd

    key = jax.random.PRNGKey(0)
    k_x, k_wfc, k_bfc, k_wp, k_bp = jax.random.split(key, 5)

    # Deterministic synthetic parameters (nn.Linear layout: (out, in))
    x = jax.random.normal(k_x, (B, T, n_embd), dtype=jnp.float32)
    w_fc = jax.random.normal(k_wfc, (hidden, n_embd), dtype=jnp.float32) * 0.02
    b_fc = jax.random.normal(k_bfc, (hidden,), dtype=jnp.float32) * 0.02
    w_proj = jax.random.normal(k_wp, (n_embd, hidden), dtype=jnp.float32) * 0.02
    b_proj = jax.random.normal(k_bp, (n_embd,), dtype=jnp.float32) * 0.02

    # Pre-transpose to (in, out) ONCE (hoisted out of the per-call path).
    wfc_t = jnp.transpose(w_fc)       # (n_embd, 4*n_embd)
    wproj_t = jnp.transpose(w_proj)   # (4*n_embd, n_embd)

    ref = mlp_reference(x, w_fc, b_fc, w_proj, b_proj)

    # 1) Default path (weights resident in VMEM), f32.
    out = jax.block_until_ready(mlp_pallas(x, wfc_t, b_fc, wproj_t, b_proj))
    assert out.shape == (B, T, n_embd)
    assert jnp.allclose(out, ref, atol=1e-4, rtol=1e-4), "resident path mismatch"

    # 2) Hidden-chunked fallback path (forced, nh=2), f32.
    out_c = jax.block_until_ready(
        mlp_pallas(x, wfc_t, b_fc, wproj_t, b_proj, th=128, force_path="chunked"))
    assert jnp.allclose(out_c, ref, atol=1e-4, rtol=1e-4), "chunked path mismatch"

    # 3) Explicit bf16 MXU operand policy (f32 accumulation inside the kernel).
    out_bf = jax.block_until_ready(
        mlp_pallas(x, wfc_t, b_fc, wproj_t, b_proj, compute_dtype=jnp.bfloat16))
    assert jnp.allclose(out_bf.astype(jnp.float32), ref, atol=3e-2, rtol=3e-2), \
        "bf16 path mismatch"

    print("KERNEL_OK")
</pallas_src>

<mosaic_0001>
module attributes {stable_mosaic.version = 11 : i64} {
  func.func @_mlp_kernel_resident(%arg0: i32, %arg1: memref<16x64xf32, #tpu.memory_space<vmem>>, %arg2: memref<64x256xf32, #tpu.memory_space<vmem>>, %arg3: memref<1x256xf32, #tpu.memory_space<vmem>>, %arg4: memref<256x64xf32, #tpu.memory_space<vmem>>, %arg5: memref<1x64xf32, #tpu.memory_space<vmem>>, %arg6: memref<16x64xf32, #tpu.memory_space<vmem>>) attributes {dimension_semantics = [#tpu.dimension_semantics<parallel>], iteration_bounds = array<i64: 1>, scalar_prefetch = 0 : i64, scratch_operands = 0 : i64, tpu.core_type = #tpu.core_type<tc>, window_params = [{transform_indices = @transform_0, window_bounds = array<i64: 16, 64>}, {pipeline_mode = #tpu.pipeline_mode<synchronous>, transform_indices = @transform_1, window_bounds = array<i64: 64, 256>}, {pipeline_mode = #tpu.pipeline_mode<synchronous>, transform_indices = @transform_2, window_bounds = array<i64: 1, 256>}, {pipeline_mode = #tpu.pipeline_mode<synchronous>, transform_indices = @transform_3, window_bounds = array<i64: 256, 64>}, {pipeline_mode = #tpu.pipeline_mode<synchronous>, transform_indices = @transform_4, window_bounds = array<i64: 1, 64>}, {transform_indices = @transform_5, window_bounds = array<i64: 16, 64>}]} {
    %c0 = arith.constant 0 : index
    %c0_0 = arith.constant 0 : index
    %0 = vector.load %arg1[%c0, %c0_0] : memref<16x64xf32, #tpu.memory_space<vmem>>, vector<16x64xf32>
    %c0_1 = arith.constant 0 : index
    %c0_2 = arith.constant 0 : index
    %1 = vector.load %arg2[%c0_1, %c0_2] : memref<64x256xf32, #tpu.memory_space<vmem>>, vector<64x256xf32>
    %cst = arith.constant dense<0.000000e+00> : vector<16x256xf32>
    %2 = tpu.matmul %0, %1, %cst {dimension_numbers = #tpu.dot_dimension_numbers<[1], [0], [0], [1], [0, 0, 1, 1], [], []>} : vector<16x64xf32>, vector<64x256xf32>, vector<16x256xf32> -> vector<16x256xf32>
    %c0_3 = arith.constant 0 : index
    %c0_4 = arith.constant 0 : index
    %3 = vector.load %arg3[%c0_3, %c0_4] : memref<1x256xf32, #tpu.memory_space<vmem>>, vector<1x256xf32>
    %4 = vector.broadcast %3 : vector<1x256xf32> to vector<16x256xf32>
    %5 = arith.addf %2, %4 : vector<16x256xf32>
    %cst_5 = arith.constant 5.000000e-01 : f32
    %6 = vector.broadcast %cst_5 : f32 to vector<16x256xf32>
    %7 = arith.mulf %6, %5 : vector<16x256xf32>
    %cst_6 = arith.constant 4.471500e-02 : f32
    %8 = vector.broadcast %cst_6 : f32 to vector<16x256xf32>
    %9 = arith.mulf %8, %5 : vector<16x256xf32>
    %10 = arith.mulf %9, %5 : vector<16x256xf32>
    %11 = arith.mulf %10, %5 : vector<16x256xf32>
    %12 = arith.addf %5, %11 : vector<16x256xf32>
    %cst_7 = arith.constant 0.797884583 : f32
    %13 = vector.broadcast %cst_7 : f32 to vector<16x256xf32>
    %14 = arith.mulf %13, %12 : vector<16x256xf32>
    %15 = math.tanh %14 : vector<16x256xf32>
    %cst_8 = arith.constant 1.000000e+00 : f32
    %16 = vector.broadcast %cst_8 : f32 to vector<16x256xf32>
    %17 = arith.addf %16, %15 : vector<16x256xf32>
    %18 = arith.mulf %7, %17 : vector<16x256xf32>
    %c0_9 = arith.constant 0 : index
    %c0_10 = arith.constant 0 : index
    %19 = vector.load %arg4[%c0_9, %c0_10] : memref<256x64xf32, #tpu.memory_space<vmem>>, vector<256x64xf32>
    %cst_11 = arith.constant dense<0.000000e+00> : vector<16x64xf32>
    %20 = tpu.matmul %18, %19, %cst_11 {dimension_numbers = #tpu.dot_dimension_numbers<[1], [0], [0], [1], [0, 0, 1, 1], [], []>} : vector<16x256xf32>, vector<256x64xf32>, vector<16x64xf32> -> vector<16x64xf32>
    %c0_12 = arith.constant 0 : index
    %c0_13 = arith.constant 0 : index
    %21 = vector.load %arg5[%c0_12, %c0_13] : memref<1x64xf32, #tpu.memory_space<vmem>>, vector<1x64xf32>
    %22 = vector.broadcast %21 : vector<1x64xf32> to vector<16x64xf32>
    %23 = arith.addf %20, %22 : vector<16x64xf32>
    %c0_14 = arith.constant 0 : index
    %c0_15 = arith.constant 0 : index
    %24 = vector.load %arg6[%c0_14, %c0_15] : memref<16x64xf32, #tpu.memory_space<vmem>>, vector<16x64xf32>
    tpu.vector_store %arg6[%c0_14, %c0_15], %23 {strides = array<i32>} : memref<16x64xf32, #tpu.memory_space<vmem>>, vector<16x64xf32>,
    return
  }
  func.func @transform_0(%arg0: i32) -> (i32, i32) {
    %c0_i32 = arith.constant 0 : i32
    %c0_i32_0 = arith.constant 0 : i32
    return %arg0, %c0_i32 : i32, i32
  }
  func.func @transform_1(%arg0: i32) -> (i32, i32) {
    %c0_i32 = arith.constant 0 : i32
    %c0_i32_0 = arith.constant 0 : i32
    %c0_i32_1 = arith.constant 0 : i32
    return %c0_i32, %c0_i32_0 : i32, i32
  }
  func.func @transform_2(%arg0: i32) -> (i32, i32) {
    %c0_i32 = arith.constant 0 : i32
    %c0_i32_0 = arith.constant 0 : i32
    %c0_i32_1 = arith.constant 0 : i32
    return %c0_i32, %c0_i32_0 : i32, i32
  }
  func.func @transform_3(%arg0: i32) -> (i32, i32) {
    %c0_i32 = arith.constant 0 : i32
    %c0_i32_0 = arith.constant 0 : i32
    %c0_i32_1 = arith.constant 0 : i32
    return %c0_i32, %c0_i32_0 : i32, i32
  }
  func.func @transform_4(%arg0: i32) -> (i32, i32) {
    %c0_i32 = arith.constant 0 : i32
    %c0_i32_0 = arith.constant 0 : i32
    %c0_i32_1 = arith.constant 0 : i32
    return %c0_i32, %c0_i32_0 : i32, i32
  }
  func.func @transform_5(%arg0: i32) -> (i32, i32) {
    %c0_i32 = arith.constant 0 : i32
    %c0_i32_0 = arith.constant 0 : i32
    return %arg0, %c0_i32 : i32, i32
  }
}

</mosaic_0001>

<bundles_post_ra>
// kernel: tpu_custom_call.1
= control target key start
LH: loop header
LB: loop body
LE: loop exit
PB: predicated region body
PF: predicated region fallthrough
CT: control target
= control target key end

     0   :  { %v428_v7 = vmov 0.0   ;;  %s634_s0 = inlined_call_operand.vmem [shape: f32[16,64], index: 0, kind: input, shape index: {}]   ;;  %s635_s1 = inlined_call_operand.vmem [shape: f32[64,256], index: 1, kind: input, shape index: {}]   ;;  %s636_s2 = inlined_call_operand.vmem [shape: f32[1,256], index: 2, kind: input, shape index: {}]   ;;  %s637_s3 = inlined_call_operand.vmem [shape: f32[256,64], index: 3, kind: input, shape index: {}]   ;;  %s638_s4 = inlined_call_operand.vmem [shape: f32[1,64], index: 4, kind: input, shape index: {}]   ;;  %s639_s5 = inlined_call_operand.hbm [shape: f32[16,64], index: 5, kind: output, shape index: {}]  }
   0x1   :  { %v24_v0 = vld [vmem:[%s635_s1 + $0x8] sm:$0xff]  ;;  %v26_v1 = vld [vmem:[%s635_s1 + $0x18] sm:$0xff]  ;;  %v23_v2 = vld [vmem:[%s635_s1] sm:$0xff]  ;;  %122 = vmatprep.mubr.f32.mxu0 %v428_v7 }
   0x2   :  { %v344_v3 = vpack.c.bf16 %v26_v1, %v24_v0  ;;  %v25_v4 = vld [vmem:[%s635_s1 + $0x10] sm:$0xff]  ;;  %v28_v5 = vld [vmem:[%s635_s1 + $0x28] sm:$0xff]  ;;  %v30_v6 = vld [vmem:[%s635_s1 + $0x38] sm:$0xff] }
   0x3   :  { %v346_v8 = vpack.c.bf16 %v25_v4, %v23_v2  ;;  %v348_v9 = vpack.c.bf16 %v30_v6, %v28_v5  ;;  %v27_v10 = vld [vmem:[%s635_s1 + $0x20] sm:$0xff]  ;;  %v29_v11 = vld [vmem:[%s635_s1 + $0x30] sm:$0xff]  ;;  %v32_v12 = vld [vmem:[%s635_s1 + $0x48] sm:$0xff] }
   0x4   :  { %345 = vmatprep.subr.bf16.mxu0 %v344_v3  ;;  %v34_v13 = vld [vmem:[%s635_s1 + $0x58] sm:$0xff]  ;;  %v350_v14 = vpack.c.bf16 %v29_v11, %v27_v10  ;;  %v31_v15 = vld [vmem:[%s635_s1 + $0x40] sm:$0xff]  ;;  %v33_v17 = vld [vmem:[%s635_s1 + $0x50] sm:$0xff] }
   0x5   :  { %347 = vmatpush1.bf16.msra.mxu0 %v346_v8  ;;  %v352_v16 = vpack.c.bf16 %v34_v13, %v32_v12  ;;  %v36_v18 = vld [vmem:[%s635_s1 + $0x68] sm:$0xff]  ;;  %v38_v19 = vld [vmem:[%s635_s1 + $0x78] sm:$0xff]  ;;  %v187_v20 = vld [vmem:[%s637_s3 + $0x80] sm:$0xff] }
   0x6   :  { %349 = vmatprep.subr.bf16.mxu0 %v348_v9  ;;  %v188_v21 = vld [vmem:[%s637_s3 + $0x88] sm:$0xff]  ;;  %v171_v22 = vld [vmem:[%s637_s3] sm:$0xff] }
   0x7   :  { %v360_v23 = vpack.c.bf16 %v188_v21, %v187_v20  ;;  %v172_v24 = vld [vmem:[%s637_s3 + $0x8] sm:$0xff] }
   0x8   :  { %10 = vsyncpa [#allocation3], 0  ;;  %v354_v25 = vpack.c.bf16 %v33_v17, %v31_v15  ;;  %v362_v26 = vpack.c.bf16 %v172_v24, %v171_v22  ;;  %v356_v27 = vpack.c.bf16 %v38_v19, %v36_v18  ;;  %v35_v28 = vld [vmem:[%s635_s1 + $0x60] sm:$0xff]  ;;  %v37_v29 = vld [vmem:[%s635_s1 + $0x70] sm:$0xff]  ;;  %vm51_vm0 = vcmask 523264   ;;  %s429_s15 = smov [#allocation2]  }
   0x9   :  { %351 = vmatpush1.bf16.msra.mxu0 %v350_v14  ;;  %361 = vmatprep.subr.bf16.mxu1 %v360_v23  ;;  %v358_v30 = vpack.c.bf16 %v37_v29, %v35_v28  ;;  %v21_v31 = vld [vmem:[%s634_s0] sm:$0xff]  ;;  %v22_v32 = vld [vmem:[%s634_s0 + $0x8] sm:$0xff]  ;;  %v189_v33 = vld [vmem:[%s637_s3 + $0x90] sm:$0xff]  ;;  %v41_v11 = vlaneseq  ;;  %s292_s16 = sshll.u32 %s429_s15, 4  ;;  %s293_s16 = int_to_ptr.vmem [resolvable:$true] %s292_s16 }
   0xa   :  { %353 = vmatprep.subr.bf16.mxu0 %v352_v16  ;;  %363 = vmatpush3.bf16.msra.mxu1 %v362_v26  ;;  %v190_v34 = vld [vmem:[%s637_s3 + $0x98] sm:$0xff]  ;;  %v173_v36 = vld [vmem:[%s637_s3 + $0x10] sm:$0xff]  ;;  %v191_v39 = vld [vmem:[%s637_s3 + $0xa0] sm:$0xff]  ;;  %s404_s17 = scalar_lea.vmem %s293_s16, 256  ;;  %p409_p1 = scmp.lt.s32.totalorder %s293_s16, %s293_s16 }
   0xb   :  { %v364_v35 = vpack.c.bf16 %v190_v34, %v189_v33  ;;  %v174_v37 = vld [vmem:[%s637_s3 + $0x18] sm:$0xff]  ;;  %v192_v40 = vld [vmem:[%s637_s3 + $0xa8] sm:$0xff]  ;;  %v175_v42 = vld [vmem:[%s637_s3 + $0x20] sm:$0xff]  ;;  %v42_v12 = vshrl.u32 %v41_v11, 7  ;;  %p405_p0 = scmp.ne.s32.totalorder %s293_s16, %s404_s17  ;;  %p410_p2 = scmp.lt.s32.totalorder %s404_s17, %s404_s17 }
   0xc   :  { %v366_v38 = vpack.c.bf16 %v174_v37, %v173_v36  ;;  %v368_v41 = vpack.c.bf16 %v192_v40, %v191_v39  ;;  %v176_v43 = vld [vmem:[%s637_s3 + $0x28] sm:$0xff]  ;;  %v193_v45 = vld [vmem:[%s637_s3 + $0xb0] sm:$0xff]  ;;  %v194_v46 = vld [vmem:[%s637_s3 + $0xb8] sm:$0xff] }
   0xd   :  { %355 = vmatpush1.bf16.msra.mxu0 %v354_v25  ;;  %365 = vmatprep.subr.bf16.mxu1 %v364_v35  ;;  %v370_v44 = vpack.c.bf16 %v176_v43, %v175_v42  ;;  %v372_v47 = vpack.c.bf16 %v194_v46, %v193_v45  ;;  %v177_v48 = vld [vmem:[%s637_s3 + $0x30] sm:$0xff]  ;;  %v178_v49 = vld [vmem:[%s637_s3 + $0x38] sm:$0xff]  ;;  %v195_v51 = vld [vmem:[%s637_s3 + $0xc0] sm:$0xff]  ;;  %v43_v13 = vsub.s32 0, %v42_v12  ;;  %v47_v15 = vsub.s32 1, %v42_v12  ;;  %p411_p3 = por %p410_p2, %p409_p1 }
   0xe   :  { %357 = vmatprep.subr.bf16.mxu0 %v356_v27  ;;  %367 = vmatpush3.bf16.msra.mxu1 %v366_v38  ;;  %v374_v50 = vpack.c.bf16 %v178_v49, %v177_v48  ;;  %v196_v52 = vld [vmem:[%s637_s3 + $0xc8] sm:$0xff]  ;;  %v179_v53 = vld [vmem:[%s637_s3 + $0x40] sm:$0xff]  ;;  %v197_v56 = vld [vmem:[%s637_s3 + $0xd0] sm:$0xff] }
   0xf   :  { %369 = vmatprep.subr.bf16.mxu1 %v368_v41  ;;  %v376_v54 = vpack.c.bf16 %v196_v52, %v195_v51  ;;  %v180_v55 = vld [vmem:[%s637_s3 + $0x48] sm:$0xff]  ;;  %v198_v57 = vld [vmem:[%s637_s3 + $0xd8] sm:$0xff]  ;;  %v181_v60 = vld [vmem:[%s637_s3 + $0x50] sm:$0xff]  ;;  %p412_p4 = pnand %p411_p3, %p405_p0 }
  0x10   :  { %v378_v58 = vpack.c.bf16 %v180_v55, %v179_v53  ;;  %v380_v59 = vpack.c.bf16 %v198_v57, %v197_v56  ;;  %v182_v61 = vld [vmem:[%s637_s3 + $0x58] sm:$0xff]  ;;  %v199_v62 = vld [vmem:[%s637_s3 + $0xe0] sm:$0xff]  ;;  %v200_v63 = vld [vmem:[%s637_s3 + $0xe8] sm:$0xff] }
  0x11   :  { %359 = vmatpush1.bf16.msra.mxu0 %v358_v30  ;;  %v382_v0 = vpack.c.bf16 %v182_v61, %v181_v60  ;;  %v384_v1 = vpack.c.bf16 %v200_v63, %v199_v62  ;;  %v183_v2 = vld [vmem:[%s637_s3 + $0x60] sm:$0xff]  ;;  %v184_v3 = vld [vmem:[%s637_s3 + $0x68] sm:$0xff]  ;;  %v201_v4 = vld [vmem:[%s637_s3 + $0xf0] sm:$0xff] }
  0x12   :  { %371 = vmatpush3.bf16.msra.mxu1 %v370_v44  ;;  %v202_v5 = vld [vmem:[%s637_s3 + $0xf8] sm:$0xff]  ;;  %v386_v6 = vpack.c.bf16 %v184_v3, %v183_v2  ;;  %v185_v8 = vld [vmem:[%s637_s3 + $0x70] sm:$0xff]  ;;  %v39_v14 = vld [vmem:[%s636_s2] sm:$0x3] }
  0x13   :  { %373 = vmatprep.subr.bf16.mxu1 %v372_v47  ;;  %v186_v9 = vld [vmem:[%s637_s3 + $0x78] sm:$0xff]  ;;  %v44_v16 = vrot.slane %v39_v14, %v43_v13  ;;  %v48_v17 = vrot.slane %v39_v14, %v47_v15  ;;  %v305_v63 = vld [vmem:[%s638_s4] ss:$0 sm:$0xff] }
  0x14   :  { %303 = vmatmul.mubr.msk.f32.vlgmr.msra.gmra.mrb[0].mxu0 %vm51_vm0, %v21_v31  ;;  %v390_v10 = vpack.c.bf16 %v186_v9, %v185_v8 }
  0x15   :  { %128 = vmatprep.mubr.f32.mxu0 %v428_v7  ;;  %v388_v7 = vpack.c.bf16 %v202_v5, %v201_v4 }
  0x16   :  { %375 = vmatpush3.bf16.msra.mxu1 %v374_v50 }
  0x17   :  { %377 = vmatprep.subr.bf16.mxu1 %v376_v54 }
  0x18   :  { %304 = vmatmul.mubr.msk.f32.gmra.mrb[2].mxu0 %vm51_vm0, %v22_v32 }
  0x1a   :  { %379 = vmatpush3.bf16.msra.mxu1 %v378_v58 }
  0x1b   :  { %381 = vmatprep.subr.bf16.mxu1 %v380_v59 }
  0x1e   :  { %383 = vmatpush3.bf16.msra.mxu1 %v382_v0 }
  0x1f   :  { %385 = vmatprep.subr.bf16.mxu1 %v384_v1 }
  0x22   :  { %387 = vmatpush3.bf16.msra.mxu1 %v386_v6 }
  0x23   :  { %389 = vmatprep.subr.bf16.mxu1 %v388_v7 }
  0x26   :  { %391 = vmatpush3.bf16.msra.mxu1 %v390_v10 }
  0xe7   :  { %v124_v18 = vpop.f32.mrb[0].mxu0 }
  0xe8   :  { %v125_v19 = vadd.f32 %v124_v18, %v44_v16  ;;  %v126_v20 = vpop.f32.mrb[1].mxu0 }
  0xe9   :  { %v127_v21 = vadd.f32 %v126_v20, %v48_v17 }
  0xea   :  { %v139_v22 = vmul.f32 0.044715, %v125_v19  ;;  %v135_v51 = vmul.f32 0.5, %v125_v19 }
  0xeb   :  { %v130_v23 = vpop.f32.mrb[2].mxu0  ;;  %v140_v24 = vmul.f32 0.044715, %v127_v21  ;;  %v136_v49 = vmul.f32 0.5, %v127_v21 }
  0xec   :  { %v143_v25 = vmul.f32 %v139_v22, %v125_v19  ;;  %v131_v26 = vadd.f32 %v130_v23, %v44_v16  ;;  %v132_v27 = vpop.f32.mrb[3].mxu0 }
  0xed   :  { %v133_v28 = vadd.f32 %v132_v27, %v48_v17  ;;  %v144_v29 = vmul.f32 %v140_v24, %v127_v21 }
  0xee   :  { %v141_v30 = vmul.f32 0.044715, %v131_v26  ;;  %v147_v31 = vmul.f32 %v143_v25, %v125_v19  ;;  %v137_v59 = vmul.f32 0.5, %v131_v26 }
  0xef   :  { %v142_v32 = vmul.f32 0.044715, %v133_v28  ;;  %v148_v33 = vmul.f32 %v144_v29, %v127_v21  ;;  %v138_v57 = vmul.f32 0.5, %v133_v28 }
  0xf0   :  { %v145_v34 = vmul.f32 %v141_v30, %v131_v26  ;;  %v151_v35 = vadd.f32 %v147_v31, %v125_v19 }
  0xf1   :  { %v146_v36 = vmul.f32 %v142_v32, %v133_v28  ;;  %v152_v37 = vadd.f32 %v148_v33, %v127_v21 }
  0xf2   :  { %v155_v38 = vmul.f32 0.7978846, %v151_v35  ;;  %v149_v39 = vmul.f32 %v145_v34, %v131_v26 }
  0xf3   :  { %v156_v40 = vmul.f32 0.7978846, %v152_v37  ;;  %v150_v41 = vmul.f32 %v146_v36, %v133_v28 }
  0xf4   :  { %396 = vtanh.f32 %v155_v38  ;;  %v153_v42 = vadd.f32 %v149_v39, %v131_v26 }
  0xf5   :  { %398 = vtanh.f32 %v156_v40  ;;  %v154_v43 = vadd.f32 %v150_v41, %v133_v28 }
  0xf6   :  { %v157_v44 = vmul.f32 0.7978846, %v153_v42 }
  0xf7   :  { %v158_v45 = vmul.f32 0.7978846, %v154_v43 }
  0xf8   :  { %400 = vtanh.f32 %v157_v44 }
  0xf9   :  { %402 = vtanh.f32 %v158_v45 }
  0xfe   :  { %v397_v46 = vpop.eup %396 }
  0xff   :  { %v399_v47 = vpop.eup %398  ;;  %v163_v48 = vadd.f32 1.0, %v397_v46 }
 0x100   :  { %v164_v50 = vadd.f32 1.0, %v399_v47 }
 0x101   :  { %v167_v55 = vmul.f32 %v163_v48, %v135_v51 }
 0x102   :  { %v401_v52 = vpop.eup %400  ;;  %v168_v53 = vmul.f32 %v164_v50, %v136_v49 }
 0x103   :  { %v403_v54 = vpop.eup %402  ;;  %v165_v56 = vadd.f32 1.0, %v401_v52 }
 0x104   :  { %274 = vmatprep.mubr.f32.mxu1 %v168_v53  ;;  %v166_v58 = vadd.f32 1.0, %v403_v54 }
 0x105   :  { %275 = vmatmul.mubr.f32.vlgmr.msra.gmra.mrb[0].mxu1 %v167_v55  ;;  %v169_v61 = vmul.f32 %v165_v56, %v137_v59 }
 0x106   :  { %v170_v60 = vmul.f32 %v166_v58, %v138_v57 }
 0x108   :  { %279 = vmatprep.mubr.f32.mxu1 %v170_v60 }
 0x109   :  { %280 = vmatmul.mubr.f32.gmra.mrb[2].mxu1 %v169_v61 }
 0x1d8   :  { %v338_v62 = vpop.f32.mrb[0].mxu1 }
 0x1d9   :  { %v339_v0 = vpop.f32.mrb[1].mxu1 }
 0x1da   :  { %v340_v1 = vadd.f32 %v339_v0, %v338_v62 }
 0x1dc   :  { %v277_v2 = vadd.f32 %v340_v1, %v305_v63  ;;  %v341_v3 = vpop.f32.mrb[2].mxu1 }
 0x1dd   :  { %v342_v4 = vpop.f32.mrb[3].mxu1 }
 0x1de   :  { %285 = vst.msk [vmem:[#allocation2] sm:$0xff] %vm51_vm0, %v277_v2  ;;  %v343_v5 = vadd.f32 %v342_v4, %v341_v3 }
 0x1e0   :  { %v282_v6 = vadd.f32 %v343_v5, %v305_v63 }
 0x1e2   :  { %286 = vst.msk [vmem:[#allocation2 + $0x8] sm:$0xff] %vm51_vm0, %v282_v6 }
 0x1e3   :  { %415 = shalt.err (!%p412_p4)
}
 0x1e4   :  { %s416_s0 = scalar_lea.hbm %s639_s5, 256 }
 0x1e5   :  { %p417_p5 = scmp.ne.s32.totalorder %s639_s5, %s416_s0  ;;  %p420_p6 = scmp.lt.u32.totalorder %s416_s0, %s639_s5 }
 0x1e7   :  { %p422_p7 = pnand %p420_p6, %p417_p5 }
 0x1e9   :  { %425 = shalt.err (!%p422_p7)
}
 0x1ea   :  { %s430_s23 = smov 128   ;;  %s431_s24 = smov 8  }
 0x1eb   :  { %298 = dma.vmem_to_hbm [thread:$0]  %s293_s16, 256, %s639_s5, [#allocation3], %s430_s23, %s430_s23, %s431_s24  }
 0x1ec   :  { %426 = dma.done.wait [#allocation3], 256  }
 0x1ed   :  { %427 = vsyncadd [#allocation3], 4294967040 }
 0x1ee   :  { %302 = vsyncpa [#allocation3], 1 }

</bundles_post_ra>
